<compile_context>
chip_gen: v5e
topology: v5e:2x2
jax: 0.10.0
libtpu: 0.0.40
codegen_flags: <defaults>
</compile_context>

<pallas_src>
import jax
import jax.numpy as jnp
from jax import lax
from jax.experimental import pallas as pl
from jax.experimental.pallas import tpu as pltpu


def vae_decoder_kernel(z_ref, w1_ref, b1_ref, w2_ref, b2_ref, o_ref):
    """Fused relu(dropout_eval(relu(z @ W1.T + b1)) @ W2.T + b2).

    Weights are in PyTorch nn.Linear layout [out_features, in_features]; both
    matmuls contract dim 1 of lhs with dim 1 of rhs, so no transpose copy is
    ever materialized.
    """
    z = z_ref[...]
    h = lax.dot_general(z, w1_ref[...], (((1,), (1,)), ((), ())),
                        preferred_element_type=jnp.float32)
    h = jnp.maximum(h + b1_ref[...], 0.0)          # f32 bias-add + ReLU (v5e-safe)
    # TODO(synk): training-mode dropout (random mask) omitted; eval-mode dropout
    # is the identity, which is what is implemented here.
    o = lax.dot_general(h.astype(w2_ref.dtype), w2_ref[...],
                        (((1,), (1,)), ((), ())),
                        preferred_element_type=jnp.float32)
    o_ref[...] = jnp.maximum(o + b2_ref[...], 0.0).astype(o_ref.dtype)


def _choose_block_b(B, compute_dtype):
    """MXU-aligned batch tile; never split tiny (overhead-bound) batches."""
    row_align = 256 if jnp.dtype(compute_dtype) == jnp.dtype(jnp.bfloat16) else 128
    if B <= row_align:
        # Overhead/latency-bound regime: one grid step; splitting only pays the
        # ~0.35 us per-step pipeline overhead repeatedly.
        return B
    # Multiple of the MXU row tile, capped at 1024 rows, and small enough that
    # the grid has >= 2 steps (lets v7x shard the batch across its 2 TCs).
    return min(1024, row_align * max(1, B // (2 * row_align)))


def _vmem_limit_bytes(block_b, H2, H1, Dp, compute_dtype):
    cs = jnp.dtype(compute_dtype).itemsize
    weights = (H1 * H2 + Dp * H1) * cs                     # resident weights
    biases = (H1 + Dp) * 4
    io = (block_b * H2 * cs + block_b * Dp * 4) * 2        # double-buffered I/O
    interm = block_b * (H1 + Dp) * 4
    est = 2 * (2 * weights + 2 * biases + io + 2 * interm)  # generous headroom
    # Floor at 32 MiB; cap at v7x's 64 MiB physical VMEM (re-derive for bigger
    # tiles on v5e/v6e's 128 MiB if needed).
    return int(min(max(est, 32 * 1024 * 1024), 64 * 1024 * 1024))


def _const_spec(shape, single_buffer):
    """BlockSpec for grid-invariant operands (weights / biases)."""
    index_map = lambda i: (0,) * len(shape)
    if single_buffer:
        # Block index never changes -> a single VMEM buffer is enough; halves
        # the resident-weight footprint (matters on v7x's 64 MiB VMEM).
        return pl.BlockSpec(shape, index_map, pipeline_mode=pl.Buffered(1))
    return pl.BlockSpec(shape, index_map)


def vae_decoder_forward(z, w1_pt, b1, w2_pt, b2, *,
                        compute_dtype=jnp.float32, block_b=None):
    """z: [B, H2]; w1_pt: [H1, H2]; b1: [H1]; w2_pt: [D, H1]; b2: [D].
    Weights stay in PyTorch nn.Linear [out, in] layout (no transposes).
    Returns [B, D] in z.dtype."""
    B, H2 = z.shape
    H1 = w1_pt.shape[0]
    D = w2_pt.shape[0]
    out_dtype = z.dtype

    # Lane-dense output: pad the output feature dim to a multiple of 128 so the
    # final store is an unmasked vst.  (No-op here since D=128.  In a real
    # model do this padding once at load time, not per call.)
    Dp = ((D + 127) // 128) * 128
    if Dp != D:
        w2_pt = jnp.pad(w2_pt, ((0, Dp - D), (0, 0)))
        b2 = jnp.pad(b2, (0, Dp - D))

    # Narrow compute dtype for the MXU (bf16 on v6e/v7x); biases stay f32 so
    # the epilogue is f32.  In a real model, cast weights once at load time.
    z_c = z.astype(compute_dtype)
    w1_c = w1_pt.astype(compute_dtype)
    w2_c = w2_pt.astype(compute_dtype)
    b1_2d = b1.reshape(1, H1).astype(jnp.float32)
    b2_2d = b2.reshape(1, Dp).astype(jnp.float32)

    if block_b is None:
        block_b = _choose_block_b(B, compute_dtype)
    grid = (pl.cdiv(B, block_b),)

    def build(single_buffer_weights):
        return pl.pallas_call(
            vae_decoder_kernel,
            out_shape=jax.ShapeDtypeStruct((B, Dp), out_dtype),
            grid_spec=pltpu.PrefetchScalarGridSpec(
                num_scalar_prefetch=0,
                grid=grid,
                in_specs=[
                    pl.BlockSpec((block_b, H2), lambda i: (i, 0)),   # z tile
                    _const_spec((H1, H2), single_buffer_weights),    # W1 (resident)
                    _const_spec((1, H1), single_buffer_weights),     # b1
                    _const_spec((Dp, H1), single_buffer_weights),    # W2 (resident)
                    _const_spec((1, Dp), single_buffer_weights),     # b2
                ],
                out_specs=pl.BlockSpec((block_b, Dp), lambda i: (i, 0)),
            ),
            compiler_params=pltpu.CompilerParams(
                dimension_semantics=("parallel",),
                vmem_limit_bytes=_vmem_limit_bytes(block_b, H2, H1, Dp,
                                                   compute_dtype)),
        )

    args = (z_c, w1_c, b1_2d, w2_c, b2_2d)
    try:
        out = build(hasattr(pl, "Buffered"))(*args)
        out = jax.block_until_ready(out)
    except Exception:
        # Fallback for jax versions without BlockSpec pipeline_mode support:
        # default double-buffered invariant blocks (correct, just 2x weight VMEM).
        out = build(False)(*args)

    return out if Dp == D else out[:, :D]


def reference_forward(z, w1_pt, b1, w2_pt, b2):
    """Plain-JAX reference mirroring the PyTorch forward (eval mode)."""
    h = jnp.maximum(z @ w1_pt.T + b1, 0.0)
    return jnp.maximum(h @ w2_pt.T + b2, 0.0)


if __name__ == "__main__":
    # Module config: hidden_size_2 = 32 (latent z), hidden_size_1 = 64,
    # input_size = 128.
    B, H2, H1, D = 8, 32, 64, 128

    key = jax.random.PRNGKey(0)
    k_z, k_w1, k_b1, k_w2, k_b2 = jax.random.split(key, 5)

    z = jax.random.normal(k_z, (B, H2), dtype=jnp.float32)
    # PyTorch Linear weight layout: [out_features, in_features].
    w1_pt = jax.random.normal(k_w1, (H1, H2), dtype=jnp.float32) * 0.05
    b1 = jax.random.normal(k_b1, (H1,), dtype=jnp.float32) * 0.05
    w2_pt = jax.random.normal(k_w2, (D, H1), dtype=jnp.float32) * 0.05
    b2 = jax.random.normal(k_b2, (D,), dtype=jnp.float32) * 0.05

    ref = reference_forward(z, w1_pt, b1, w2_pt, b2)

    # f32 path: exact match to the PyTorch module in eval mode.
    out = jax.block_until_ready(vae_decoder_forward(z, w1_pt, b1, w2_pt, b2))
    assert out.shape == (B, D)
    assert jnp.allclose(out, ref, atol=1e-5, rtol=1e-5), "f32 mismatch vs reference"

    # bf16 MXU path (v6e/v7x): f32 accumulate, tolerance loosened for input
    # rounding only.
    out_bf16 = jax.block_until_ready(
        vae_decoder_forward(z, w1_pt, b1, w2_pt, b2, compute_dtype=jnp.bfloat16))
    assert out_bf16.shape == (B, D)
    assert jnp.allclose(out_bf16, ref, atol=5e-2, rtol=5e-2), "bf16 mismatch vs reference"

    print("KERNEL_OK")
</pallas_src>

<mosaic_0001>
module attributes {stable_mosaic.version = 11 : i64} {
  func.func @vae_decoder_kernel(%arg0: i32, %arg1: memref<8x32xf32, #tpu.memory_space<vmem>>, %arg2: memref<64x32xf32, #tpu.memory_space<vmem>>, %arg3: memref<1x64xf32, #tpu.memory_space<vmem>>, %arg4: memref<128x64xf32, #tpu.memory_space<vmem>>, %arg5: memref<1x128xf32, #tpu.memory_space<vmem>>, %arg6: memref<8x128xf32, #tpu.memory_space<vmem>>) attributes {dimension_semantics = [#tpu.dimension_semantics<parallel>], iteration_bounds = array<i64: 1>, scalar_prefetch = 0 : i64, scratch_operands = 0 : i64, tpu.core_type = #tpu.core_type<tc>, window_params = [{transform_indices = @transform_0, window_bounds = array<i64: 8, 32>}, {pipeline_mode = #tpu.pipeline_mode<synchronous>, transform_indices = @transform_1, window_bounds = array<i64: 64, 32>}, {pipeline_mode = #tpu.pipeline_mode<synchronous>, transform_indices = @transform_2, window_bounds = array<i64: 1, 64>}, {pipeline_mode = #tpu.pipeline_mode<synchronous>, transform_indices = @transform_3, window_bounds = array<i64: 128, 64>}, {pipeline_mode = #tpu.pipeline_mode<synchronous>, transform_indices = @transform_4, window_bounds = array<i64: 1, 128>}, {transform_indices = @transform_5, window_bounds = array<i64: 8, 128>}]} {
    %c0 = arith.constant 0 : index
    %c0_0 = arith.constant 0 : index
    %0 = vector.load %arg1[%c0, %c0_0] : memref<8x32xf32, #tpu.memory_space<vmem>>, vector<8x32xf32>
    %c0_1 = arith.constant 0 : index
    %c0_2 = arith.constant 0 : index
    %1 = vector.load %arg2[%c0_1, %c0_2] : memref<64x32xf32, #tpu.memory_space<vmem>>, vector<64x32xf32>
    %cst = arith.constant dense<0.000000e+00> : vector<8x64xf32>
    %2 = tpu.matmul %0, %1, %cst {dimension_numbers = #tpu.dot_dimension_numbers<[1], [1], [0], [0], [0, 0, 1, 0], [], []>} : vector<8x32xf32>, vector<64x32xf32>, vector<8x64xf32> -> vector<8x64xf32>
    %c0_3 = arith.constant 0 : index
    %c0_4 = arith.constant 0 : index
    %3 = vector.load %arg3[%c0_3, %c0_4] : memref<1x64xf32, #tpu.memory_space<vmem>>, vector<1x64xf32>
    %4 = vector.broadcast %3 : vector<1x64xf32> to vector<8x64xf32>
    %5 = arith.addf %2, %4 : vector<8x64xf32>
    %cst_5 = arith.constant 0.000000e+00 : f32
    %6 = vector.broadcast %cst_5 : f32 to vector<8x64xf32>
    %7 = arith.maximumf %5, %6 : vector<8x64xf32>
    %c0_6 = arith.constant 0 : index
    %c0_7 = arith.constant 0 : index
    %8 = vector.load %arg4[%c0_6, %c0_7] : memref<128x64xf32, #tpu.memory_space<vmem>>, vector<128x64xf32>
    %cst_8 = arith.constant dense<0.000000e+00> : vector<8x128xf32>
    %9 = tpu.matmul %7, %8, %cst_8 {dimension_numbers = #tpu.dot_dimension_numbers<[1], [1], [0], [0], [0, 0, 1, 0], [], []>} : vector<8x64xf32>, vector<128x64xf32>, vector<8x128xf32> -> vector<8x128xf32>
    %c0_9 = arith.constant 0 : index
    %c0_10 = arith.constant 0 : index
    %10 = vector.load %arg5[%c0_9, %c0_10] : memref<1x128xf32, #tpu.memory_space<vmem>>, vector<1x128xf32>
    %11 = vector.broadcast %10 : vector<1x128xf32> to vector<8x128xf32>
    %12 = arith.addf %9, %11 : vector<8x128xf32>
    %cst_11 = arith.constant 0.000000e+00 : f32
    %13 = vector.broadcast %cst_11 : f32 to vector<8x128xf32>
    %14 = arith.maximumf %12, %13 : vector<8x128xf32>
    %c0_12 = arith.constant 0 : index
    %c0_13 = arith.constant 0 : index
    %15 = vector.load %arg6[%c0_12, %c0_13] : memref<8x128xf32, #tpu.memory_space<vmem>>, vector<8x128xf32>
    tpu.vector_store %arg6[%c0_12, %c0_13], %14 {strides = array<i32>} : memref<8x128xf32, #tpu.memory_space<vmem>>, vector<8x128xf32>,
    return
  }
  func.func @transform_0(%arg0: i32) -> (i32, i32) {
    %c0_i32 = arith.constant 0 : i32
    %c0_i32_0 = arith.constant 0 : i32
    return %arg0, %c0_i32 : i32, i32
  }
  func.func @transform_1(%arg0: i32) -> (i32, i32) {
    %c0_i32 = arith.constant 0 : i32
    %c0_i32_0 = arith.constant 0 : i32
    %c0_i32_1 = arith.constant 0 : i32
    return %c0_i32, %c0_i32_0 : i32, i32
  }
  func.func @transform_2(%arg0: i32) -> (i32, i32) {
    %c0_i32 = arith.constant 0 : i32
    %c0_i32_0 = arith.constant 0 : i32
    %c0_i32_1 = arith.constant 0 : i32
    return %c0_i32, %c0_i32_0 : i32, i32
  }
  func.func @transform_3(%arg0: i32) -> (i32, i32) {
    %c0_i32 = arith.constant 0 : i32
    %c0_i32_0 = arith.constant 0 : i32
    %c0_i32_1 = arith.constant 0 : i32
    return %c0_i32, %c0_i32_0 : i32, i32
  }
  func.func @transform_4(%arg0: i32) -> (i32, i32) {
    %c0_i32 = arith.constant 0 : i32
    %c0_i32_0 = arith.constant 0 : i32
    %c0_i32_1 = arith.constant 0 : i32
    return %c0_i32, %c0_i32_0 : i32, i32
  }
  func.func @transform_5(%arg0: i32) -> (i32, i32) {
    %c0_i32 = arith.constant 0 : i32
    %c0_i32_0 = arith.constant 0 : i32
    return %arg0, %c0_i32 : i32, i32
  }
}

module attributes {stable_mosaic.version = 11 : i64} {
  func.func @vae_decoder_kernel(%arg0: i32, %arg1: memref<8x32xf32, #tpu.memory_space<vmem>>, %arg2: memref<64x32xf32, #tpu.memory_space<vmem>>, %arg3: memref<1x64xf32, #tpu.memory_space<vmem>>, %arg4: memref<128x64xf32, #tpu.memory_space<vmem>>, %arg5: memref<1x128xf32, #tpu.memory_space<vmem>>, %arg6: memref<8x128xf32, #tpu.memory_space<vmem>>) attributes {dimension_semantics = [#tpu.dimension_semantics<parallel>], iteration_bounds = array<i64: 1>, scalar_prefetch = 0 : i64, scratch_operands = 0 : i64, tpu.core_type = #tpu.core_type<tc>, window_params = [{transform_indices = @transform_0, window_bounds = array<i64: 8, 32>}, {pipeline_mode = #tpu.pipeline_mode<synchronous>, transform_indices = @transform_1, window_bounds = array<i64: 64, 32>}, {pipeline_mode = #tpu.pipeline_mode<synchronous>, transform_indices = @transform_2, window_bounds = array<i64: 1, 64>}, {pipeline_mode = #tpu.pipeline_mode<synchronous>, transform_indices = @transform_3, window_bounds = array<i64: 128, 64>}, {pipeline_mode = #tpu.pipeline_mode<synchronous>, transform_indices = @transform_4, window_bounds = array<i64: 1, 128>}, {transform_indices = @transform_5, window_bounds = array<i64: 8, 128>}]} {
    %c0 = arith.constant 0 : index
    %c0_0 = arith.constant 0 : index
    %0 = vector.load %arg1[%c0, %c0_0] : memref<8x32xf32, #tpu.memory_space<vmem>>, vector<8x32xf32>
    %c0_1 = arith.constant 0 : index
    %c0_2 = arith.constant 0 : index
    %1 = vector.load %arg2[%c0_1, %c0_2] : memref<64x32xf32, #tpu.memory_space<vmem>>, vector<64x32xf32>
    %cst = arith.constant dense<0.000000e+00> : vector<8x64xf32>
    %2 = tpu.matmul %0, %1, %cst {dimension_numbers = #tpu.dot_dimension_numbers<[1], [1], [0], [0], [0, 0, 1, 0], [], []>} : vector<8x32xf32>, vector<64x32xf32>, vector<8x64xf32> -> vector<8x64xf32>
    %c0_3 = arith.constant 0 : index
    %c0_4 = arith.constant 0 : index
    %3 = vector.load %arg3[%c0_3, %c0_4] : memref<1x64xf32, #tpu.memory_space<vmem>>, vector<1x64xf32>
    %4 = vector.broadcast %3 : vector<1x64xf32> to vector<8x64xf32>
    %5 = arith.addf %2, %4 : vector<8x64xf32>
    %cst_5 = arith.constant 0.000000e+00 : f32
    %6 = vector.broadcast %cst_5 : f32 to vector<8x64xf32>
    %7 = arith.maximumf %5, %6 : vector<8x64xf32>
    %c0_6 = arith.constant 0 : index
    %c0_7 = arith.constant 0 : index
    %8 = vector.load %arg4[%c0_6, %c0_7] : memref<128x64xf32, #tpu.memory_space<vmem>>, vector<128x64xf32>
    %cst_8 = arith.constant dense<0.000000e+00> : vector<8x128xf32>
    %9 = tpu.matmul %7, %8, %cst_8 {dimension_numbers = #tpu.dot_dimension_numbers<[1], [1], [0], [0], [0, 0, 1, 0], [], []>} : vector<8x64xf32>, vector<128x64xf32>, vector<8x128xf32> -> vector<8x128xf32>
    %c0_9 = arith.constant 0 : index
    %c0_10 = arith.constant 0 : index
    %10 = vector.load %arg5[%c0_9, %c0_10] : memref<1x128xf32, #tpu.memory_space<vmem>>, vector<1x128xf32>
    %11 = vector.broadcast %10 : vector<1x128xf32> to vector<8x128xf32>
    %12 = arith.addf %9, %11 : vector<8x128xf32>
    %cst_11 = arith.constant 0.000000e+00 : f32
    %13 = vector.broadcast %cst_11 : f32 to vector<8x128xf32>
    %14 = arith.maximumf %12, %13 : vector<8x128xf32>
    %c0_12 = arith.constant 0 : index
    %c0_13 = arith.constant 0 : index
    %15 = vector.load %arg6[%c0_12, %c0_13] : memref<8x128xf32, #tpu.memory_space<vmem>>, vector<8x128xf32>
    tpu.vector_store %arg6[%c0_12, %c0_13], %14 {strides = array<i32>} : memref<8x128xf32, #tpu.memory_space<vmem>>, vector<8x128xf32>,
    return
  }
  func.func @transform_0(%arg0: i32) -> (i32, i32) {
    %c0_i32 = arith.constant 0 : i32
    %c0_i32_0 = arith.constant 0 : i32
    return %arg0, %c0_i32 : i32, i32
  }
  func.func @transform_1(%arg0: i32) -> (i32, i32) {
    %c0_i32 = arith.constant 0 : i32
    %c0_i32_0 = arith.constant 0 : i32
    %c0_i32_1 = arith.constant 0 : i32
    return %c0_i32, %c0_i32_0 : i32, i32
  }
  func.func @transform_2(%arg0: i32) -> (i32, i32) {
    %c0_i32 = arith.constant 0 : i32
    %c0_i32_0 = arith.constant 0 : i32
    %c0_i32_1 = arith.constant 0 : i32
    return %c0_i32, %c0_i32_0 : i32, i32
  }
  func.func @transform_3(%arg0: i32) -> (i32, i32) {
    %c0_i32 = arith.constant 0 : i32
    %c0_i32_0 = arith.constant 0 : i32
    %c0_i32_1 = arith.constant 0 : i32
    return %c0_i32, %c0_i32_0 : i32, i32
  }
  func.func @transform_4(%arg0: i32) -> (i32, i32) {
    %c0_i32 = arith.constant 0 : i32
    %c0_i32_0 = arith.constant 0 : i32
    %c0_i32_1 = arith.constant 0 : i32
    return %c0_i32, %c0_i32_0 : i32, i32
  }
  func.func @transform_5(%arg0: i32) -> (i32, i32) {
    %c0_i32 = arith.constant 0 : i32
    %c0_i32_0 = arith.constant 0 : i32
    return %arg0, %c0_i32 : i32, i32
  }
}

</mosaic_0001>

<bundles_post_ra>
// kernel: tpu_custom_call.1
= control target key start
LH: loop header
LB: loop body
LE: loop exit
PB: predicated region body
PF: predicated region fallthrough
CT: control target
= control target key end

     0   :  { %vm34_vm0 = vcmask 261120   ;;  %vm103_vm1 = vcmask 523264   ;;  %s389_s0 = inlined_call_operand.vmem [shape: f32[8,32], index: 0, kind: input, shape index: {}]   ;;  %s390_s1 = inlined_call_operand.vmem [shape: f32[64,32], index: 1, kind: input, shape index: {}]   ;;  %s391_s2 = inlined_call_operand.vmem [shape: f32[1,64], index: 2, kind: input, shape index: {}]   ;;  %s392_s3 = inlined_call_operand.vmem [shape: f32[128,64], index: 3, kind: input, shape index: {}]   ;;  %s393_s4 = inlined_call_operand.vmem [shape: f32[1,128], index: 4, kind: input, shape index: {}]   ;;  %s394_s5 = inlined_call_operand.hbm [shape: f32[8,128], index: 5, kind: output, shape index: {}]  }
   0x1   :  { %v29_v0 = vld [vmem:[%s390_s1 + $0x38] sm:$0xff]  ;;  %v28_v1 = vld [vmem:[%s390_s1 + $0x30] sm:$0xff]  ;;  %v27_v4 = vld [vmem:[%s390_s1 + $0x28] sm:$0xff] }
   0x2   :  { %193 = vmatpush.xpose.msk.msra.mxu0 %vm34_vm0, %v29_v0  ;;  %v98_v2 = vld [vmem:[%s392_s3 + $0x78] sm:$0xff]  ;;  %v97_v3 = vld [vmem:[%s392_s3 + $0x70] sm:$0xff] }
   0x3   :  { %202 = vmatpush.xpose.msk.msra.mxu1 %vm103_vm1, %v98_v2 }
   0x6   :  { %194 = vmatpush.xpose.msk.msra.mxu0 %vm34_vm0, %v28_v1 }
   0x7   :  { %10 = vsyncpa [#allocation3], 0  ;;  %203 = vmatpush.xpose.msk.msra.mxu1 %vm103_vm1, %v97_v3  ;;  %v96_v5 = vld [vmem:[%s392_s3 + $0x68] sm:$0xff]  ;;  %v26_v6 = vld [vmem:[%s390_s1 + $0x20] sm:$0xff]  ;;  %s248_s20 = smov [#allocation2]   ;;  %s184_s23 = sshll.u32 %s394_s5, 4  ;;  %s185_s23 = int_to_ptr.hbm [resolvable:$true] %s184_s23 }
   0x8   :  { %v95_v7 = vld [vmem:[%s392_s3 + $0x60] sm:$0xff]  ;;  %v25_v8 = vld [vmem:[%s390_s1 + $0x18] sm:$0xff]  ;;  %v24_v10 = vld [vmem:[%s390_s1 + $0x10] sm:$0xff]  ;;  %s182_s21 = sshll.u32 %s248_s20, 4  ;;  %s183_s21 = int_to_ptr.vmem [resolvable:$true] %s182_s21 }
   0x9   :  { %v94_v9 = vld [vmem:[%s392_s3 + $0x58] sm:$0xff]  ;;  %v93_v11 = vld [vmem:[%s392_s3 + $0x50] sm:$0xff]  ;;  %v23_v12 = vld [vmem:[%s390_s1 + $0x8] sm:$0xff] }
   0xa   :  { %195 = vmatpush.xpose.msk.msra.mxu0 %vm34_vm0, %v27_v4  ;;  %v92_v13 = vld [vmem:[%s392_s3 + $0x48] sm:$0xff]  ;;  %v22_v14 = vld [vmem:[%s390_s1] sm:$0xff]  ;;  %v90_v17 = vld [vmem:[%s392_s3 + $0x38] sm:$0xff] }
   0xb   :  { %204 = vmatpush.xpose.msk.msra.mxu1 %vm103_vm1, %v96_v5  ;;  %v21_v15 = vld [vmem:[%s389_s0] sm:$0xff]  ;;  %v89_v18 = vld [vmem:[%s392_s3 + $0x30] sm:$0xff]  ;;  %v88_v19 = vld [vmem:[%s392_s3 + $0x28] sm:$0xff] }
   0xc   :  { %v91_v16 = vld [vmem:[%s392_s3 + $0x40] sm:$0xff]  ;;  %v86_v21 = vld [vmem:[%s392_s3 + $0x18] sm:$0xff]  ;;  %v85_v22 = vld [vmem:[%s392_s3 + $0x10] sm:$0xff] }
   0xd   :  { %v87_v20 = vld [vmem:[%s392_s3 + $0x20] sm:$0xff]  ;;  %v84_v23 = vld [vmem:[%s392_s3 + $0x8] sm:$0xff] }
   0xe   :  { %196 = vmatpush.xpose.msk.msra.mxu0 %vm34_vm0, %v26_v6  ;;  %v83_v24 = vld [vmem:[%s392_s3] sm:$0xff] }
   0xf   :  { %205 = vmatpush.xpose.msk.msra.mxu1 %vm103_vm1, %v95_v7  ;;  %v220_v25 = vld [vmem:[%s391_s2] ss:$0 sm:$0xff] }
  0x10   :  { %v221_v29 = vld [vmem:[%s393_s4] ss:$0 sm:$0xff] }
  0x12   :  { %197 = vmatpush.xpose.msk.msra.mxu0 %vm34_vm0, %v25_v8 }
  0x13   :  { %206 = vmatpush.xpose.msk.msra.mxu1 %vm103_vm1, %v94_v9 }
  0x16   :  { %198 = vmatpush.xpose.msk.msra.mxu0 %vm34_vm0, %v24_v10 }
  0x17   :  { %207 = vmatpush.xpose.msk.msra.mxu1 %vm103_vm1, %v93_v11 }
  0x1a   :  { %199 = vmatpush.xpose.msk.msra.mxu0 %vm34_vm0, %v23_v12 }
  0x1b   :  { %208 = vmatpush.xpose.msk.msra.mxu1 %vm103_vm1, %v92_v13 }
  0x1e   :  { %200 = vmatpush.xpose.msk.msra.mxu0 %vm34_vm0, %v22_v14 }
  0x1f   :  { %209 = vmatpush.xpose.msk.msra.mxu1 %vm103_vm1, %v91_v16 }
  0x21   :  { %201 = vmatmul.msk.f32.vlgmr.msra.gmra.mxu0 %vm34_vm0, %v21_v15 }
  0x23   :  { %210 = vmatpush.xpose.msk.msra.mxu1 %vm103_vm1, %v90_v17 }
  0x27   :  { %211 = vmatpush.xpose.msk.msra.mxu1 %vm103_vm1, %v89_v18 }
  0x2b   :  { %212 = vmatpush.xpose.msk.msra.mxu1 %vm103_vm1, %v88_v19 }
  0x2f   :  { %213 = vmatpush.xpose.msk.msra.mxu1 %vm103_vm1, %v87_v20 }
  0x33   :  { %214 = vmatpush.xpose.msk.msra.mxu1 %vm103_vm1, %v86_v21 }
  0x37   :  { %215 = vmatpush.xpose.msk.msra.mxu1 %vm103_vm1, %v85_v22 }
  0x3b   :  { %216 = vmatpush.xpose.msk.msra.mxu1 %vm103_vm1, %v84_v23 }
  0x3f   :  { %217 = vmatpush.xpose.msk.msra.mxu1 %vm103_vm1, %v83_v24 }
  0x9e   :  { %v79_v26 = vpop.f32.mrf.mxu0 }
  0x9f   :  { %v80_v27 = vadd.f32 %v220_v25, %v79_v26 }
  0xa1   :  { %v82_v28 = vmax.f32 %v80_v27, 0.0 }
  0xa3   :  { %218 = vmatmul.msk.f32.vlgmr.msra.gmra.mxu1 %vm103_vm1, %v82_v28 }
 0x120   :  { %v172_v30 = vpop.f32.mrf.mxu1 }
 0x121   :  { %v173_v31 = vadd.f32 %v221_v29, %v172_v30 }
 0x123   :  { %v175_v32 = vmax.f32 %v173_v31, 0.0 }
 0x125   :  { %176 = vst [vmem:[#allocation2] sm:$0xff] %v175_v32 }
 0x126   :  { %187 = dma.vmem_to_hbm [thread:$0]  %s183_s21, 128, %s185_s23, [#allocation3]  }
 0x127   :  { %246 = dma.done.wait [#allocation3], 128  }
 0x128   :  { %247 = vsyncadd [#allocation3], 4294967168 }
 0x129   :  { %192 = vsyncpa [#allocation3], 1 }

// kernel: tpu_custom_call.1
= control target key start
LH: loop header
LB: loop body
LE: loop exit
PB: predicated region body
PF: predicated region fallthrough
CT: control target
= control target key end

     0   :  { %vm34_vm0 = vcmask 261120   ;;  %vm103_vm1 = vcmask 523264   ;;  %s389_s0 = inlined_call_operand.vmem [shape: f32[8,32], index: 0, kind: input, shape index: {}]   ;;  %s390_s1 = inlined_call_operand.vmem [shape: f32[64,32], index: 1, kind: input, shape index: {}]   ;;  %s391_s2 = inlined_call_operand.vmem [shape: f32[1,64], index: 2, kind: input, shape index: {}]   ;;  %s392_s3 = inlined_call_operand.vmem [shape: f32[128,64], index: 3, kind: input, shape index: {}]   ;;  %s393_s4 = inlined_call_operand.vmem [shape: f32[1,128], index: 4, kind: input, shape index: {}]   ;;  %s394_s5 = inlined_call_operand.hbm [shape: f32[8,128], index: 5, kind: output, shape index: {}]  }
   0x1   :  { %v29_v0 = vld [vmem:[%s390_s1 + $0x38] sm:$0xff]  ;;  %v28_v1 = vld [vmem:[%s390_s1 + $0x30] sm:$0xff]  ;;  %v27_v4 = vld [vmem:[%s390_s1 + $0x28] sm:$0xff] }
   0x2   :  { %193 = vmatpush.xpose.msk.msra.mxu0 %vm34_vm0, %v29_v0  ;;  %v98_v2 = vld [vmem:[%s392_s3 + $0x78] sm:$0xff]  ;;  %v97_v3 = vld [vmem:[%s392_s3 + $0x70] sm:$0xff] }
   0x3   :  { %202 = vmatpush.xpose.msk.msra.mxu1 %vm103_vm1, %v98_v2 }
   0x6   :  { %194 = vmatpush.xpose.msk.msra.mxu0 %vm34_vm0, %v28_v1 }
   0x7   :  { %10 = vsyncpa [#allocation3], 0  ;;  %203 = vmatpush.xpose.msk.msra.mxu1 %vm103_vm1, %v97_v3  ;;  %v96_v5 = vld [vmem:[%s392_s3 + $0x68] sm:$0xff]  ;;  %v26_v6 = vld [vmem:[%s390_s1 + $0x20] sm:$0xff]  ;;  %s248_s20 = smov [#allocation2]   ;;  %s184_s23 = sshll.u32 %s394_s5, 4  ;;  %s185_s23 = int_to_ptr.hbm [resolvable:$true] %s184_s23 }
   0x8   :  { %v95_v7 = vld [vmem:[%s392_s3 + $0x60] sm:$0xff]  ;;  %v25_v8 = vld [vmem:[%s390_s1 + $0x18] sm:$0xff]  ;;  %v24_v10 = vld [vmem:[%s390_s1 + $0x10] sm:$0xff]  ;;  %s182_s21 = sshll.u32 %s248_s20, 4  ;;  %s183_s21 = int_to_ptr.vmem [resolvable:$true] %s182_s21 }
   0x9   :  { %v94_v9 = vld [vmem:[%s392_s3 + $0x58] sm:$0xff]  ;;  %v93_v11 = vld [vmem:[%s392_s3 + $0x50] sm:$0xff]  ;;  %v23_v12 = vld [vmem:[%s390_s1 + $0x8] sm:$0xff] }
   0xa   :  { %195 = vmatpush.xpose.msk.msra.mxu0 %vm34_vm0, %v27_v4  ;;  %v92_v13 = vld [vmem:[%s392_s3 + $0x48] sm:$0xff]  ;;  %v22_v14 = vld [vmem:[%s390_s1] sm:$0xff]  ;;  %v90_v17 = vld [vmem:[%s392_s3 + $0x38] sm:$0xff] }
   0xb   :  { %204 = vmatpush.xpose.msk.msra.mxu1 %vm103_vm1, %v96_v5  ;;  %v21_v15 = vld [vmem:[%s389_s0] sm:$0xff]  ;;  %v89_v18 = vld [vmem:[%s392_s3 + $0x30] sm:$0xff]  ;;  %v88_v19 = vld [vmem:[%s392_s3 + $0x28] sm:$0xff] }
   0xc   :  { %v91_v16 = vld [vmem:[%s392_s3 + $0x40] sm:$0xff]  ;;  %v86_v21 = vld [vmem:[%s392_s3 + $0x18] sm:$0xff]  ;;  %v85_v22 = vld [vmem:[%s392_s3 + $0x10] sm:$0xff] }
   0xd   :  { %v87_v20 = vld [vmem:[%s392_s3 + $0x20] sm:$0xff]  ;;  %v84_v23 = vld [vmem:[%s392_s3 + $0x8] sm:$0xff] }
   0xe   :  { %196 = vmatpush.xpose.msk.msra.mxu0 %vm34_vm0, %v26_v6  ;;  %v83_v24 = vld [vmem:[%s392_s3] sm:$0xff] }
   0xf   :  { %205 = vmatpush.xpose.msk.msra.mxu1 %vm103_vm1, %v95_v7  ;;  %v220_v25 = vld [vmem:[%s391_s2] ss:$0 sm:$0xff] }
  0x10   :  { %v221_v29 = vld [vmem:[%s393_s4] ss:$0 sm:$0xff] }
  0x12   :  { %197 = vmatpush.xpose.msk.msra.mxu0 %vm34_vm0, %v25_v8 }
  0x13   :  { %206 = vmatpush.xpose.msk.msra.mxu1 %vm103_vm1, %v94_v9 }
  0x16   :  { %198 = vmatpush.xpose.msk.msra.mxu0 %vm34_vm0, %v24_v10 }
  0x17   :  { %207 = vmatpush.xpose.msk.msra.mxu1 %vm103_vm1, %v93_v11 }
  0x1a   :  { %199 = vmatpush.xpose.msk.msra.mxu0 %vm34_vm0, %v23_v12 }
  0x1b   :  { %208 = vmatpush.xpose.msk.msra.mxu1 %vm103_vm1, %v92_v13 }
  0x1e   :  { %200 = vmatpush.xpose.msk.msra.mxu0 %vm34_vm0, %v22_v14 }
  0x1f   :  { %209 = vmatpush.xpose.msk.msra.mxu1 %vm103_vm1, %v91_v16 }
  0x21   :  { %201 = vmatmul.msk.f32.vlgmr.msra.gmra.mxu0 %vm34_vm0, %v21_v15 }
  0x23   :  { %210 = vmatpush.xpose.msk.msra.mxu1 %vm103_vm1, %v90_v17 }
  0x27   :  { %211 = vmatpush.xpose.msk.msra.mxu1 %vm103_vm1, %v89_v18 }
  0x2b   :  { %212 = vmatpush.xpose.msk.msra.mxu1 %vm103_vm1, %v88_v19 }
  0x2f   :  { %213 = vmatpush.xpose.msk.msra.mxu1 %vm103_vm1, %v87_v20 }
  0x33   :  { %214 = vmatpush.xpose.msk.msra.mxu1 %vm103_vm1, %v86_v21 }
  0x37   :  { %215 = vmatpush.xpose.msk.msra.mxu1 %vm103_vm1, %v85_v22 }
  0x3b   :  { %216 = vmatpush.xpose.msk.msra.mxu1 %vm103_vm1, %v84_v23 }
  0x3f   :  { %217 = vmatpush.xpose.msk.msra.mxu1 %vm103_vm1, %v83_v24 }
  0x9e   :  { %v79_v26 = vpop.f32.mrf.mxu0 }
  0x9f   :  { %v80_v27 = vadd.f32 %v220_v25, %v79_v26 }
  0xa1   :  { %v82_v28 = vmax.f32 %v80_v27, 0.0 }
  0xa3   :  { %218 = vmatmul.msk.f32.vlgmr.msra.gmra.mxu1 %vm103_vm1, %v82_v28 }
 0x120   :  { %v172_v30 = vpop.f32.mrf.mxu1 }
 0x121   :  { %v173_v31 = vadd.f32 %v221_v29, %v172_v30 }
 0x123   :  { %v175_v32 = vmax.f32 %v173_v31, 0.0 }
 0x125   :  { %176 = vst [vmem:[#allocation2] sm:$0xff] %v175_v32 }
 0x126   :  { %187 = dma.vmem_to_hbm [thread:$0]  %s183_s21, 128, %s185_s23, [#allocation3]  }
 0x127   :  { %246 = dma.done.wait [#allocation3], 128  }
 0x128   :  { %247 = vsyncadd [#allocation3], 4294967168 }
 0x129   :  { %192 = vsyncpa [#allocation3], 1 }

</bundles_post_ra>
